<compile_context>
chip_gen: v6e
topology: v6e:2x2x1
jax: 0.10.0
libtpu: 0.0.40
codegen_flags: <defaults>
</compile_context>

<pallas_src>
import math

import jax
import jax.numpy as jnp
from jax.experimental import pallas as pl
from jax.experimental.pallas import tpu as pltpu


# ----------------------------- in-kernel math -------------------------------

def _erf(x):
    # Abramowitz & Stegun 7.1.26 (max abs err ~1.5e-7 in f32).  The reciprocal
    # lowers to the EUP (vrcp) slot, so it is essentially free next to MXU work.
    p = 0.3275911
    a1, a2, a3, a4, a5 = (0.254829592, -0.284496736, 1.421413741,
                          -1.453152027, 1.061405429)
    ax = jnp.abs(x)
    t = pl.reciprocal(1.0 + p * ax, approx=True)
    poly = ((((a5 * t + a4) * t + a3) * t + a2) * t + a1) * t
    y = 1.0 - poly * jnp.exp(-ax * ax)
    return jnp.where(x >= 0.0, y, -y)


def _gelu_exact(x):
    return 0.5 * x * (1.0 + _erf(x * 0.7071067811865476))


def _ffn_kernel(x_ref, w1_ref, b1_ref, w2_ref, b2_ref, o_ref, acc_ref):
    # x_ref: (tm, C) f32, w1_ref: (C, th) bf16, b1_ref: (1, th) f32,
    # w2_ref: (th, C) bf16, b2_ref: (1, C) f32, o_ref: (tm, C) out_dtype,
    # acc_ref: (tm, C) f32 scratch, resident across the hidden (reduction) axis.
    j = pl.program_id(1)

    @pl.when(j == 0)
    def _():
        acc_ref[...] = jnp.zeros_like(acc_ref)

    # In-kernel f32 -> bf16 cast of the activation tile (VPU, hidden under MXU).
    x_bf = x_ref[...].astype(jnp.bfloat16)

    # c_fc for this hidden chunk: bf16 MXU, f32 accumulation; exact-erf GELU in f32.
    h = jnp.dot(x_bf, w1_ref[...], preferred_element_type=jnp.float32)
    h = _gelu_exact(h + b1_ref[...])

    # c_proj contribution of this hidden chunk, accumulated in f32.
    acc_ref[...] += jnp.dot(h.astype(jnp.bfloat16), w2_ref[...],
                            preferred_element_type=jnp.float32)

    @pl.when(j == pl.num_programs(1) - 1)
    def _():
        o_ref[...] = (acc_ref[...] + b2_ref[...]).astype(o_ref.dtype)


# ----------------------------- planning helpers -----------------------------

def _round_up(x, m):
    return ((x + m - 1) // m) * m


def _vmem_limit_bytes():
    """Per-chip scoped-VMEM request: ~78% of physical, capped at 100 MiB.
    v5e/v6e (128 MiB) -> ~100 MiB; v7x (64 MiB/TC) -> ~50 MiB."""
    try:
        cap = int(pltpu.get_tpu_info().vmem_capacity_bytes)
    except Exception:
        cap = 64 * 1024 * 1024  # conservative: assume v7x-sized VMEM
    return min(int(cap * 0.78), 100 * 1024 * 1024)


def _plan_tiles(N, C, H, out_bytes, vmem_limit):
    """Pick (tm, th).  Prefer weight-resident (th = H) when the bf16 weights fit;
    otherwise tile the hidden axis in multiples of 128 and grow tm instead."""
    budget = int(vmem_limit * 0.9)  # headroom for compiler-internal scratch

    def working_set(tm, th):
        w_bytes = 2 * (C * th * 2 + th * C * 2)     # bf16 W1/W2 (double-buffered)
        b_bytes = 2 * (th * 4 + C * 4)              # f32 biases (double-buffered)
        x_bytes = 2 * tm * C * 4                    # f32 x block (double-buffered)
        o_bytes = 2 * tm * C * out_bytes            # output block (double-buffered)
        acc_bytes = tm * C * 4                      # f32 accumulator scratch
        return w_bytes + b_bytes + x_bytes + o_bytes + acc_bytes

    # Hidden axis: weight-resident if it fits alongside a modest (128-row) tile.
    if working_set(128, H) <= budget:
        th = H
    else:
        th = None
        for cand in (512, 256, 128):
            if H % cand == 0 and working_set(128, cand) <= budget:
                th = cand
                break
        if th is None:
            th = H  # last resort; let the compiler try

    # Row axis: biggest candidate that fits; keep >= 2 row blocks when there is
    # enough work so v7x's second TensorCore is not idle on the parallel axis.
    n_pad16 = _round_up(max(N, 1), 16)
    tm = 16
    for cand in (1024, 512, 256, 128, 64, 32, 16):
        if cand > n_pad16:
            continue
        if N >= 32 and (N + cand - 1) // cand < 2:
            continue
        if working_set(cand, th) <= budget:
            tm = cand
            break
    return tm, th


# ----------------------------- public wrapper --------------------------------

def prepare_params(w_fc, b_fc, w_proj, b_proj):
    """One-time parameter prep (hoisted off the hot path): bf16 MXU weights,
    f32 biases kept 2-D (1, features)."""
    return dict(
        w_fc=jnp.asarray(w_fc, jnp.bfloat16),
        b_fc=jnp.asarray(b_fc, jnp.float32).reshape(1, -1),
        w_proj=jnp.asarray(w_proj, jnp.bfloat16),
        b_proj=jnp.asarray(b_proj, jnp.float32).reshape(1, -1),
    )


def feed_forward(x, params, *, out_dtype=jnp.float32):
    """x: (B, T, C) float32.  params: prepare_params() output.
    out_dtype=jnp.bfloat16 matches the autocast policy and halves writeback."""
    B, T, C = x.shape
    H = params["w_fc"].shape[1]
    assert params["w_fc"].shape == (C, H)
    assert params["w_proj"].shape == (H, C)
    N = B * T

    vmem_limit = _vmem_limit_bytes()
    out_bytes = jnp.dtype(out_dtype).itemsize
    tm, th = _plan_tiles(N, C, H, out_bytes, vmem_limit)

    # Pad rows up to a multiple of tm (never fall back to one monolithic block).
    n_pad = _round_up(N, tm)
    x2 = x.reshape(N, C)
    if n_pad != N:
        x2 = jnp.pad(x2, ((0, n_pad - N), (0, 0)))

    grid = (n_pad // tm, H // th)

    out = pl.pallas_call(
        _ffn_kernel,
        out_shape=jax.ShapeDtypeStruct((n_pad, C), out_dtype),
        grid_spec=pltpu.PrefetchScalarGridSpec(
            num_scalar_prefetch=0,
            grid=grid,
            in_specs=[
                pl.BlockSpec((tm, C), lambda i, j: (i, 0)),   # x row block (f32)
                pl.BlockSpec((C, th), lambda i, j: (0, j)),   # W_fc chunk (bf16)
                pl.BlockSpec((1, th), lambda i, j: (0, j)),   # b_fc chunk (f32)
                pl.BlockSpec((th, C), lambda i, j: (j, 0)),   # W_proj chunk (bf16)
                pl.BlockSpec((1, C), lambda i, j: (0, 0)),    # b_proj (grid-invariant)
            ],
            out_specs=pl.BlockSpec((tm, C), lambda i, j: (i, 0)),
            scratch_shapes=[pltpu.VMEM((tm, C), jnp.float32)],
        ),
        compiler_params=pltpu.CompilerParams(
            dimension_semantics=("parallel", "arbitrary"),
            vmem_limit_bytes=vmem_limit,
        ),
    )(x2, params["w_fc"], params["b_fc"], params["w_proj"], params["b_proj"])

    if n_pad != N:
        out = out[:N]
    return out.reshape(B, T, C)


# ----------------------------- reference + test ------------------------------

def _reference(x, params_f32):
    """Pure-JAX reference mirroring the module's autocast-bf16 forward
    (bf16 matmul inputs, f32 accumulation, exact-erf GELU)."""
    B, T, C = x.shape
    xb = x.reshape(-1, C).astype(jnp.bfloat16)
    h = jnp.dot(xb, params_f32["w_fc"].astype(jnp.bfloat16),
                preferred_element_type=jnp.float32) + params_f32["b_fc"]
    h = jax.nn.gelu(h, approximate=False)
    out = jnp.dot(h.astype(jnp.bfloat16), params_f32["w_proj"].astype(jnp.bfloat16),
                  preferred_element_type=jnp.float32) + params_f32["b_proj"]
    return out.reshape(B, T, C)


if __name__ == "__main__":
    # Small config consistent with the module: n_embd=32 -> hidden 4*n_embd=128.
    B, T, C = 2, 8, 32
    H = 4 * C

    key = jax.random.PRNGKey(0)
    k = jax.random.split(key, 3)

    def init_linear(kk, fan_in, fan_out):
        # torch.nn.Linear default init: U(-1/sqrt(fan_in), 1/sqrt(fan_in))
        kw, kb = jax.random.split(kk)
        bound = 1.0 / math.sqrt(fan_in)
        w = jax.random.uniform(kw, (fan_in, fan_out), jnp.float32, -bound, bound)
        b = jax.random.uniform(kb, (1, fan_out), jnp.float32, -bound, bound)
        return w, b

    w_fc, b_fc = init_linear(k[0], C, H)
    w_proj, b_proj = init_linear(k[1], H, C)
    params_f32 = dict(w_fc=w_fc, b_fc=b_fc, w_proj=w_proj, b_proj=b_proj)
    params = prepare_params(w_fc, b_fc, w_proj, b_proj)   # one-time bf16 cast

    x = jax.random.normal(k[2], (B, T, C), jnp.float32)

    ref = _reference(x, params_f32)

    # f32 output (default)
    out = jax.block_until_ready(feed_forward(x, params))
    assert out.shape == (B, T, C)
    assert jnp.allclose(out, ref, atol=2e-2, rtol=2e-2), "mismatch vs. JAX reference (f32 out)"

    # bf16 output (autocast-matching writeback path)
    out_bf = jax.block_until_ready(feed_forward(x, params, out_dtype=jnp.bfloat16))
    assert out_bf.dtype == jnp.bfloat16
    assert jnp.allclose(out_bf.astype(jnp.float32), ref, atol=2e-2, rtol=2e-2), \
        "mismatch vs. JAX reference (bf16 out)"

    print("KERNEL_OK")
</pallas_src>

<mosaic_0001>
module attributes {stable_mosaic.version = 11 : i64} {
  func.func @_ffn_kernel(%arg0: i32, %arg1: i32, %arg2: memref<16x32xf32, #tpu.memory_space<vmem>>, %arg3: memref<32x128xbf16, #tpu.memory_space<vmem>>, %arg4: memref<1x128xf32, #tpu.memory_space<vmem>>, %arg5: memref<128x32xbf16, #tpu.memory_space<vmem>>, %arg6: memref<1x32xf32, #tpu.memory_space<vmem>>, %arg7: memref<16x32xf32, #tpu.memory_space<vmem>>, %arg8: memref<16x32xf32, #tpu.memory_space<vmem>>) attributes {dimension_semantics = [#tpu.dimension_semantics<parallel>, #tpu.dimension_semantics<arbitrary>], iteration_bounds = array<i64: 1, 1>, scalar_prefetch = 0 : i64, scratch_operands = 1 : i64, tpu.core_type = #tpu.core_type<tc>, window_params = [{transform_indices = @transform_0, window_bounds = array<i64: 16, 32>}, {transform_indices = @transform_1, window_bounds = array<i64: 32, 128>}, {transform_indices = @transform_2, window_bounds = array<i64: 1, 128>}, {transform_indices = @transform_3, window_bounds = array<i64: 128, 32>}, {pipeline_mode = #tpu.pipeline_mode<synchronous>, transform_indices = @transform_4, window_bounds = array<i64: 1, 32>}, {transform_indices = @transform_5, window_bounds = array<i64: 16, 32>}]} {
    %c0_i32 = arith.constant 0 : i32
    %0 = arith.cmpi eq, %arg1, %c0_i32 : i32
    %1 = arith.extui %0 : i1 to i32
    %c0_i32_0 = arith.constant 0 : i32
    %2 = arith.cmpi ne, %1, %c0_i32_0 : i32
    scf.if %2 {
      %cst_29 = arith.constant 0.000000e+00 : f32
      %58 = vector.broadcast %cst_29 : f32 to vector<16x32xf32>
      %c0_30 = arith.constant 0 : index
      %c0_31 = arith.constant 0 : index
      %59 = vector.load %arg8[%c0_30, %c0_31] : memref<16x32xf32, #tpu.memory_space<vmem>>, vector<16x32xf32>
      tpu.vector_store %arg8[%c0_30, %c0_31], %58 {strides = array<i32>} : memref<16x32xf32, #tpu.memory_space<vmem>>, vector<16x32xf32>,
    } else {
    }
    %c0 = arith.constant 0 : index
    %c0_1 = arith.constant 0 : index
    %3 = vector.load %arg2[%c0, %c0_1] : memref<16x32xf32, #tpu.memory_space<vmem>>, vector<16x32xf32>
    %4 = arith.truncf %3 : vector<16x32xf32> to vector<16x32xbf16>
    %c0_2 = arith.constant 0 : index
    %c0_3 = arith.constant 0 : index
    %5 = vector.load %arg3[%c0_2, %c0_3] : memref<32x128xbf16, #tpu.memory_space<vmem>>, vector<32x128xbf16>
    %cst = arith.constant dense<0.000000e+00> : vector<16x128xf32>
    %6 = tpu.matmul %4, %5, %cst {dimension_numbers = #tpu.dot_dimension_numbers<[1], [0], [0], [1], [0, 0, 1, 1], [], []>} : vector<16x32xbf16>, vector<32x128xbf16>, vector<16x128xf32> -> vector<16x128xf32>
    %c0_4 = arith.constant 0 : index
    %c0_5 = arith.constant 0 : index
    %7 = vector.load %arg4[%c0_4, %c0_5] : memref<1x128xf32, #tpu.memory_space<vmem>>, vector<1x128xf32>
    %8 = vector.broadcast %7 : vector<1x128xf32> to vector<16x128xf32>
    %9 = arith.addf %6, %8 : vector<16x128xf32>
    %cst_6 = arith.constant 5.000000e-01 : f32
    %10 = vector.broadcast %cst_6 : f32 to vector<16x128xf32>
    %11 = arith.mulf %10, %9 : vector<16x128xf32>
    %cst_7 = arith.constant 0.707106769 : f32
    %12 = vector.broadcast %cst_7 : f32 to vector<16x128xf32>
    %13 = arith.mulf %9, %12 : vector<16x128xf32>
    %14 = math.absf %13 : vector<16x128xf32>
    %cst_8 = arith.constant 0.327591091 : f32
    %15 = vector.broadcast %cst_8 : f32 to vector<16x128xf32>
    %16 = arith.mulf %15, %14 : vector<16x128xf32>
    %cst_9 = arith.constant 1.000000e+00 : f32
    %17 = vector.broadcast %cst_9 : f32 to vector<16x128xf32>
    %18 = arith.addf %17, %16 : vector<16x128xf32>
    %19 = tpu.reciprocal %18 {approx = true} : vector<16x128xf32> -> vector<16x128xf32>
    %cst_10 = arith.constant 1.06140542 : f32
    %20 = vector.broadcast %cst_10 : f32 to vector<16x128xf32>
    %21 = arith.mulf %20, %19 : vector<16x128xf32>
    %cst_11 = arith.constant -1.45315206 : f32
    %22 = vector.broadcast %cst_11 : f32 to vector<16x128xf32>
    %23 = arith.addf %21, %22 : vector<16x128xf32>
    %24 = arith.mulf %23, %19 : vector<16x128xf32>
    %cst_12 = arith.constant 1.42141378 : f32
    %25 = vector.broadcast %cst_12 : f32 to vector<16x128xf32>
    %26 = arith.addf %24, %25 : vector<16x128xf32>
    %27 = arith.mulf %26, %19 : vector<16x128xf32>
    %cst_13 = arith.constant -0.284496725 : f32
    %28 = vector.broadcast %cst_13 : f32 to vector<16x128xf32>
    %29 = arith.addf %27, %28 : vector<16x128xf32>
    %30 = arith.mulf %29, %19 : vector<16x128xf32>
    %cst_14 = arith.constant 0.254829586 : f32
    %31 = vector.broadcast %cst_14 : f32 to vector<16x128xf32>
    %32 = arith.addf %30, %31 : vector<16x128xf32>
    %33 = arith.mulf %32, %19 : vector<16x128xf32>
    %cst_15 = arith.constant 0.000000e+00 : f32
    %34 = vector.broadcast %cst_15 : f32 to vector<16x128xf32>
    %35 = arith.subf %34, %14 : vector<16x128xf32>
    %36 = arith.mulf %35, %14 : vector<16x128xf32>
    %37 = math.exp %36 : vector<16x128xf32>
    %38 = arith.mulf %33, %37 : vector<16x128xf32>
    %cst_16 = arith.constant 1.000000e+00 : f32
    %39 = vector.broadcast %cst_16 : f32 to vector<16x128xf32>
    %40 = arith.subf %39, %38 : vector<16x128xf32>
    %cst_17 = arith.constant 0.000000e+00 : f32
    %41 = vector.broadcast %cst_17 : f32 to vector<16x128xf32>
    %42 = arith.cmpf oge, %13, %41 : vector<16x128xf32>
    %cst_18 = arith.constant 0.000000e+00 : f32
    %43 = vector.broadcast %cst_18 : f32 to vector<16x128xf32>
    %44 = arith.subf %43, %40 : vector<16x128xf32>
    %45 = arith.select %42, %40, %44 : vector<16x128xi1>, vector<16x128xf32>
    %cst_19 = arith.constant 1.000000e+00 : f32
    %46 = vector.broadcast %cst_19 : f32 to vector<16x128xf32>
    %47 = arith.addf %46, %45 : vector<16x128xf32>
    %48 = arith.mulf %11, %47 : vector<16x128xf32>
    %c0_20 = arith.constant 0 : index
    %c0_21 = arith.constant 0 : index
    %49 = vector.load %arg8[%c0_20, %c0_21] : memref<16x32xf32, #tpu.memory_space<vmem>>, vector<16x32xf32>
    %50 = arith.truncf %48 : vector<16x128xf32> to vector<16x128xbf16>
    %c0_22 = arith.constant 0 : index
    %c0_23 = arith.constant 0 : index
    %51 = vector.load %arg5[%c0_22, %c0_23] : memref<128x32xbf16, #tpu.memory_space<vmem>>, vector<128x32xbf16>
    %cst_24 = arith.constant dense<0.000000e+00> : vector<16x32xf32>
    %52 = tpu.matmul %50, %51, %cst_24 {dimension_numbers = #tpu.dot_dimension_numbers<[1], [0], [0], [1], [0, 0, 1, 1], [], []>} : vector<16x128xbf16>, vector<128x32xbf16>, vector<16x32xf32> -> vector<16x32xf32>
    %53 = arith.addf %49, %52 : vector<16x32xf32>
    %c0_25 = arith.constant 0 : index
    %c0_26 = arith.constant 0 : index
    %54 = vector.load %arg8[%c0_25, %c0_26] : memref<16x32xf32, #tpu.memory_space<vmem>>, vector<16x32xf32>
    tpu.vector_store %arg8[%c0_25, %c0_26], %53 {strides = array<i32>} : memref<16x32xf32, #tpu.memory_space<vmem>>, vector<16x32xf32>,
    %c0_i32_27 = arith.constant 0 : i32
    %55 = arith.cmpi eq, %arg1, %c0_i32_27 : i32
    %56 = arith.extui %55 : i1 to i32
    %c0_i32_28 = arith.constant 0 : i32
    %57 = arith.cmpi ne, %56, %c0_i32_28 : i32
    scf.if %57 {
      %c0_29 = arith.constant 0 : index
      %c0_30 = arith.constant 0 : index
      %58 = vector.load %arg8[%c0_29, %c0_30] : memref<16x32xf32, #tpu.memory_space<vmem>>, vector<16x32xf32>
      %c0_31 = arith.constant 0 : index
      %c0_32 = arith.constant 0 : index
      %59 = vector.load %arg6[%c0_31, %c0_32] : memref<1x32xf32, #tpu.memory_space<vmem>>, vector<1x32xf32>
      %60 = vector.broadcast %59 : vector<1x32xf32> to vector<16x32xf32>
      %61 = arith.addf %58, %60 : vector<16x32xf32>
      %c0_33 = arith.constant 0 : index
      %c0_34 = arith.constant 0 : index
      %62 = vector.load %arg7[%c0_33, %c0_34] : memref<16x32xf32, #tpu.memory_space<vmem>>, vector<16x32xf32>
      tpu.vector_store %arg7[%c0_33, %c0_34], %61 {strides = array<i32>} : memref<16x32xf32, #tpu.memory_space<vmem>>, vector<16x32xf32>,
    } else {
    }
    return
  }
  func.func @transform_0(%arg0: i32, %arg1: i32) -> (i32, i32) {
    %c0_i32 = arith.constant 0 : i32
    %c0_i32_0 = arith.constant 0 : i32
    return %arg0, %c0_i32 : i32, i32
  }
  func.func @transform_1(%arg0: i32, %arg1: i32) -> (i32, i32) {
    %c0_i32 = arith.constant 0 : i32
    %c0_i32_0 = arith.constant 0 : i32
    return %c0_i32, %arg1 : i32, i32
  }
  func.func @transform_2(%arg0: i32, %arg1: i32) -> (i32, i32) {
    %c0_i32 = arith.constant 0 : i32
    %c0_i32_0 = arith.constant 0 : i32
    return %c0_i32, %arg1 : i32, i32
  }
  func.func @transform_3(%arg0: i32, %arg1: i32) -> (i32, i32) {
    %c0_i32 = arith.constant 0 : i32
    %c0_i32_0 = arith.constant 0 : i32
    return %arg1, %c0_i32 : i32, i32
  }
  func.func @transform_4(%arg0: i32, %arg1: i32) -> (i32, i32) {
    %c0_i32 = arith.constant 0 : i32
    %c0_i32_0 = arith.constant 0 : i32
    %c0_i32_1 = arith.constant 0 : i32
    return %c0_i32, %c0_i32_0 : i32, i32
  }
  func.func @transform_5(%arg0: i32, %arg1: i32) -> (i32, i32) {
    %c0_i32 = arith.constant 0 : i32
    %c0_i32_0 = arith.constant 0 : i32
    return %arg0, %c0_i32 : i32, i32
  }
}

</mosaic_0001>

<bundles_post_ra>
// kernel: tpu_custom_call.1
= control target key start
LH: loop header
LB: loop body
LE: loop exit
PB: predicated region body
PF: predicated region fallthrough
CT: control target
= control target key end

     0   :  { %v394_v1 = vmov 0.0   ;;  %vm395_vm0 = vmmov 0   ;;  %vm26_vm1 = vcmask 261120   ;;  %s481_s0 = inlined_call_operand.vmem [shape: f32[16,32], index: 0, kind: input, shape index: {}]   ;;  %s482_s1 = inlined_call_operand.vmem [shape: bf16[32,128], index: 1, kind: input, shape index: {}]   ;;  %s483_s2 = inlined_call_operand.vmem [shape: f32[1,128], index: 2, kind: input, shape index: {}]   ;;  %s484_s3 = inlined_call_operand.vmem [shape: bf16[128,32], index: 3, kind: input, shape index: {}]   ;;  %s485_s4 = inlined_call_operand.vmem [shape: f32[1,32], index: 4, kind: input, shape index: {}]   ;;  %s486_s5 = inlined_call_operand.hbm [shape: f32[16,32], index: 5, kind: output, shape index: {}]  }
   0x1   :  { %v354_v0 = vld [vmem:[%s482_s1 + $0x8] sm:$0xff]   ;;  %321 = vmatprep.subr.bf16.mxu0 %v394_v1  ;;  %329 = vmatprep.subr.bf16.mxu1 %v394_v1  ;;  %v355_v2 = vld [vmem:[%s482_s1] sm:$0xff]   ;;  %27 = vst.msk [vmem:[#allocation2] sm:$0xff] %vm26_vm1, %v394_v1  ;;  %28 = vst.msk [vmem:[#allocation2 + $0x8] sm:$0xff] %vm26_vm1, %v394_v1 }
   0x2   :  { %322 = vmatpush3.bf16.msra.mxu0 %v354_v0  ;;  %325 = vmatprep.mubr.msk.bf16.mxu0 %vm395_vm0, %v394_v1  ;;  %v29_v3 = vld [vmem:[%s481_s0] sm:$0xff]  ;;  %v30_v4 = vld [vmem:[%s481_s0 + $0x8] sm:$0xff] }
   0x3   :  { %323 = vmatprep.subr.bf16.mxu0 %v394_v1  ;;  %345 = vmatprep.mubr.msk.bf16.mxu1 %vm395_vm0, %v394_v1  ;;  %v31_v5 = vpack.c.bf16 %v30_v4, %v29_v3 }
   0x6   :  { %324 = vmatpush3.bf16.msra.mxu0 %v355_v2 }
   0x7   :  { %10 = vsyncpa [#allocation4], 0  ;;  %v356_v6 = vld [vmem:[%s484_s3 + $0x38] sm:$0xff]   ;;  %v357_v7 = vld [vmem:[%s484_s3 + $0x30] sm:$0xff]   ;;  %s396_s17 = smov [#allocation3]  }
   0x8   :  { %330 = vmatpush3.bf16.msra.mxu1 %v356_v6  ;;  %v358_v8 = vld [vmem:[%s484_s3 + $0x28] sm:$0xff]   ;;  %v359_v9 = vld [vmem:[%s484_s3 + $0x20] sm:$0xff]   ;;  %v360_v10 = vld [vmem:[%s484_s3 + $0x18] sm:$0xff]   ;;  %s285_s18 = sshll.u32 %s396_s17, 4  ;;  %s286_s18 = int_to_ptr.vmem [resolvable:$true] %s285_s18 }
   0x9   :  { %326 = vmatmul.mubr.msk.bf16.vlgmr.msra.gmra.mxu0 %vm26_vm1, %v31_v5  ;;  %331 = vmatprep.subr.bf16.mxu1 %v394_v1  ;;  %v361_v11 = vld [vmem:[%s484_s3 + $0x10] sm:$0xff]   ;;  %v362_v12 = vld [vmem:[%s484_s3 + $0x8] sm:$0xff]   ;;  %v363_v13 = vld [vmem:[%s484_s3] sm:$0xff]   ;;  %s372_s19 = scalar_lea.vmem %s286_s18, 256  ;;  %p377_p1 = scmp.lt.s32.totalorder %s286_s18, %s286_s18 }
   0xa   :  { %v296_v14 = vld [vmem:[%s483_s2] ss:$0 sm:$0xff]  ;;  %p373_p0 = scmp.ne.s32.totalorder %s286_s18, %s372_s19  ;;  %p378_p2 = scmp.lt.s32.totalorder %s372_s19, %s372_s19 }
   0xc   :  { %332 = vmatpush3.bf16.msra.mxu1 %v357_v7  ;;  %p379_p3 = por %p378_p2, %p377_p1 }
   0xd   :  { %333 = vmatprep.subr.bf16.mxu1 %v394_v1 }
   0xe   :  { %p380_p4 = pnand %p379_p3, %p373_p0 }
  0x10   :  { %334 = vmatpush3.bf16.msra.mxu1 %v358_v8  ;;  %v152_v8 = vld [vmem:[#allocation2] sm:$0xff] }
  0x11   :  { %335 = vmatprep.subr.bf16.mxu1 %v394_v1 }
  0x14   :  { %336 = vmatpush3.bf16.msra.mxu1 %v359_v9 }
  0x15   :  { %337 = vmatprep.subr.bf16.mxu1 %v394_v1 }
  0x18   :  { %338 = vmatpush3.bf16.msra.mxu1 %v360_v10 }
  0x19   :  { %339 = vmatprep.subr.bf16.mxu1 %v394_v1 }
  0x1c   :  { %340 = vmatpush3.bf16.msra.mxu1 %v361_v11 }
  0x1d   :  { %341 = vmatprep.subr.bf16.mxu1 %v394_v1 }
  0x20   :  { %342 = vmatpush3.bf16.msra.mxu1 %v362_v12  ;;  %v153_v12 = vld [vmem:[#allocation2 + $0x8] sm:$0xff] }
  0x21   :  { %343 = vmatprep.subr.bf16.mxu1 %v394_v1 }
  0x24   :  { %344 = vmatpush3.bf16.msra.mxu1 %v363_v13 }
  0xc9   :  { %v93_v15 = vpop.f32.mrf.mxu0 }
  0xca   :  { %v94_v16 = vadd.f32 %v296_v14, %v93_v15 }
  0xcb   :  { %v327_v17 = vpop.f32.mrf.mxu0 }
  0xcc   :  { %v102_v18 = vmul.f32 0.70710677, %v94_v16  ;;  %v100_v2 = vmul.f32 0.5, %v94_v16  ;;  %v308_v16 = vld [vmem:[%s485_s4] ss:$0 sm:$0xff] }
  0xcd   :  { %v96_v19 = vpop.f32.mrf.mxu0 }
  0xce   :  { %v104_v20 = vand.u32 2147483647, %v102_v18  ;;  %v97_v21 = vadd.f32 %v296_v14, %v96_v19  ;;  %vm142_vm2 = vcmp.ge.f32.partialorder %v102_v18, 0.0 }
  0xcf   :  { %v328_v22 = vpop.f32.mrf.mxu0 }
  0xd0   :  { %v106_v23 = vmul.f32 0.3275911, %v104_v20  ;;  %v103_v24 = vmul.f32 0.70710677, %v97_v21  ;;  %v130_v29 = vsub.f32 0.0, %v104_v20  ;;  %v101_v3 = vmul.f32 0.5, %v97_v21 }
  0xd2   :  { %v108_v25 = vadd.f32 1.0, %v106_v23  ;;  %v105_v26 = vand.u32 2147483647, %v103_v24  ;;  %v132_v30 = vmul.f32 %v130_v29, %v104_v20  ;;  %vm143_vm3 = vcmp.ge.f32.partialorder %v103_v24, 0.0 }
  0xd4   :  { %364 = vrcp.f32 %v108_v25  ;;  %v107_v27 = vmul.f32 0.3275911, %v105_v26  ;;  %v131_v31 = vsub.f32 0.0, %v105_v26  ;;  %v134_v34 = vmul.f32 1.442695, %v132_v30 }
  0xd6   :  { %v109_v28 = vadd.f32 1.0, %v107_v27  ;;  %v133_v35 = vmul.f32 %v131_v31, %v105_v26 }
  0xd8   :  { %366 = vrcp.f32 %v109_v28  ;;  %v136_v40 = vmul.f32 1.442695, %v133_v35 }
  0xd9   :  { %368 = vpow2.f32 %v134_v34 }
  0xda   :  { %370 = vpow2.f32 %v136_v40 }
  0xe1   :  { %v365_v32 = vpop.eup %364 }
  0xe2   :  { %v112_v33 = vmul.f32 1.0614054, %v365_v32 }
  0xe4   :  { %v114_v36 = vadd.f32 -1.4531521, %v112_v33 }
  0xe5   :  { %v367_v37 = vpop.eup %366 }
  0xe6   :  { %v116_v38 = vmul.f32 %v365_v32, %v114_v36  ;;  %v113_v39 = vmul.f32 1.0614054, %v367_v37  ;;  %v369_v53 = vpop.eup %368 }
  0xe7   :  { %v371_v58 = vpop.eup %370 }
  0xe8   :  { %v118_v41 = vadd.f32 1.4214138, %v116_v38  ;;  %v115_v42 = vadd.f32 -1.4531521, %v113_v39 }
  0xea   :  { %v120_v43 = vmul.f32 %v365_v32, %v118_v41  ;;  %v117_v44 = vmul.f32 %v367_v37, %v115_v42 }
  0xec   :  { %v122_v45 = vadd.f32 -0.28449672, %v120_v43  ;;  %v119_v46 = vadd.f32 1.4214138, %v117_v44 }
  0xee   :  { %v124_v47 = vmul.f32 %v365_v32, %v122_v45  ;;  %v121_v48 = vmul.f32 %v367_v37, %v119_v46 }
  0xf0   :  { %v126_v49 = vadd.f32 0.2548296, %v124_v47  ;;  %v123_v50 = vadd.f32 -0.28449672, %v121_v48 }
  0xf2   :  { %v128_v51 = vmul.f32 %v365_v32, %v126_v49  ;;  %v125_v52 = vmul.f32 %v367_v37, %v123_v50 }
  0xf4   :  { %v138_v54 = vmul.f32 %v369_v53, %v128_v51  ;;  %v127_v55 = vadd.f32 0.2548296, %v125_v52 }
  0xf6   :  { %v140_v56 = vsub.f32 1.0, %v138_v54  ;;  %v129_v57 = vmul.f32 %v367_v37, %v127_v55 }
  0xf8   :  { %v144_v59 = vsub.f32 0.0, %v140_v56  ;;  %v139_v60 = vmul.f32 %v371_v58, %v129_v57 }
  0xfa   :  { %v146_v61 = vsel %vm142_vm2, %v140_v56, %v144_v59  ;;  %v141_v62 = vsub.f32 1.0, %v139_v60 }
  0xfb   :  { %v148_v0 = vadd.f32 1.0, %v146_v61 }
  0xfc   :  { %v145_v63 = vsub.f32 0.0, %v141_v62 }
  0xfd   :  { %v150_v5 = vmul.f32 %v148_v0, %v100_v2 }
  0xfe   :  { %v147_v1 = vsel %vm143_vm3, %v141_v62, %v145_v63 }
  0xff   :  { %v149_v4 = vadd.f32 1.0, %v147_v1 }
 0x101   :  { %v151_v6 = vmul.f32 %v149_v4, %v101_v3 }
 0x103   :  { %v154_v7 = vpack.c.bf16 %v151_v6, %v150_v5 }
 0x105   :  { %346 = vmatmul.mubr.bf16.vlgmr.msra.gmra.mxu1 %v154_v7 }
 0x1c5   :  { %v253_v9 = vpop.f32.mrf.mxu1 }
 0x1c6   :  { %v260_v10 = vadd.f32 %v253_v9, %v152_v8 }
 0x1c7   :  { %v347_v11 = vpop.f32.mrf.mxu1 }
 0x1c8   :  { %262 = vst.msk [vmem:[#allocation2] sm:$0xff] %vm26_vm1, %v260_v10 }
 0x1c9   :  { %v256_v13 = vpop.f32.mrf.mxu1 }
 0x1ca   :  { %v261_v14 = vadd.f32 %v256_v13, %v153_v12 }
 0x1cb   :  { %v348_v15 = vpop.f32.mrf.mxu1 }
 0x1cc   :  { %263 = vst.msk [vmem:[#allocation2 + $0x8] sm:$0xff] %vm26_vm1, %v261_v14 }
 0x1cf   :  { %v267_v17 = vld [vmem:[#allocation2] sm:$0xff] }
 0x1d0   :  { %v276_v18 = vadd.f32 %v308_v16, %v267_v17 }
 0x1d2   :  { %278 = vst.msk [vmem:[#allocation3] sm:$0xff] %vm26_vm1, %v276_v18 }
 0x1d3   :  { %v268_v19 = vld [vmem:[#allocation2 + $0x8] sm:$0xff] }
 0x1d4   :  { %v277_v20 = vadd.f32 %v308_v16, %v268_v19 }
 0x1d6   :  { %279 = vst.msk [vmem:[#allocation3 + $0x8] sm:$0xff] %vm26_vm1, %v277_v20 }
 0x1d7   :  { %383 = shalt.err (!%p380_p4)
}
 0x1d8   :  { %s397_s20 = smov 128   ;;  %s398_s4 = smov 8  }
 0x1d9   :  { %291 = dma.vmem_to_hbm [thread:$0]  %s286_s18, 256, %s486_s5, [#allocation4], %s397_s20, %s397_s20, %s398_s4  }
 0x1da   :  { %392 = dma.done.wait [#allocation4], 256  }
 0x1db   :  { %393 = vsyncadd [#allocation4], 4294967040 }
 0x1dc   :  { %295 = vsyncpa [#allocation4], 1 }

</bundles_post_ra>
